<compile_context>
chip_gen: v7x
topology: tpu7x:2x2x1
jax: 0.10.0
libtpu: 0.0.40
codegen_flags: <defaults>
</compile_context>

<pallas_src>
import jax
import jax.numpy as jnp
from jax.experimental import pallas as pl
from jax.experimental.pallas import tpu as pltpu

CONDS = 6
TARGETS = 3
IN_DIM = TARGETS + CONDS   # 9
HID = 128

_HIGHEST = jax.lax.Precision.HIGHEST


def _round_up(n, m):
    return ((n + m - 1) // m) * m


def _disc_kernel(x_ref, w1_ref, b1_ref, w2_ref, b2_ref, w34_ref, b34_ref, o_ref):
    # Layer 1: Linear(9 -> 128); bf16 operands, f32 accumulation on the MXU.
    x = x_ref[...].astype(jnp.bfloat16)                    # in-kernel VPU cast
    h = jnp.dot(x, w1_ref[...], preferred_element_type=jnp.float32) + b1_ref[...]
    h = jnp.maximum(h, 0.2 * h)                            # LeakyReLU(0.2), f32 VPU
    # Dropout(0.3): identity in eval mode.
    # TODO(synk): training-mode dropout (pltpu.prng_* Bernoulli masks) not emitted.

    # Layer 2: Linear(128 -> 128); bf16 operands on the MXU, f32 accumulation.
    h = jnp.dot(h.astype(jnp.bfloat16), w2_ref[...],
                preferred_element_type=jnp.float32) + b2_ref[...]
    h = jnp.maximum(h, 0.2 * h)                            # LeakyReLU(0.2)
    # Dropout(0.3): identity in eval mode.

    # Layers 3+4 folded offline: h @ (w3 @ w4) + (b3 @ w4 + b4).
    # VPU multiply + lane reduce with keepdims -> (TB, 1) column, no relayout.
    logit = jnp.sum(h * w34_ref[...], axis=-1, keepdims=True) + b34_ref[0, 0]

    # Sigmoid: exp + approximate reciprocal, both on the EUP slot.
    sig = pl.reciprocal(1.0 + jnp.exp(-logit), approx=True)
    o_ref[...] = sig.astype(o_ref.dtype)


def discriminator_forward(x, params, *, tile_b=4096):
    """x: [B, 9] float32; params: dict of (w1,b1,...,w4,b4). Returns [B, 1] f32."""
    B = x.shape[0]
    # >= 2 grid steps for large batches (v7x dual TensorCore sharding), big tiles
    # otherwise to amortize per-step pipeline overhead.
    TB = min(int(tile_b), _round_up(-(-max(B, 1) // 2), 128))
    B_pad = _round_up(B, TB)
    grid = (B_pad // TB,)

    # Keep x in f32 (cast to bf16 happens in-kernel); pad only if TB doesn't divide B.
    if B_pad != B:
        x = jnp.pad(x, ((0, B_pad - B), (0, 0)))

    w1 = params["w1"].astype(jnp.bfloat16)
    b1 = params["b1"].astype(jnp.float32)
    w2 = params["w2"].astype(jnp.bfloat16)
    b2 = params["b2"].astype(jnp.float32)
    # Fold Linear(128,128) -> Linear(128,1) (no activation between them).
    w34 = jnp.dot(params["w3"], params["w4"], precision=_HIGHEST).reshape(1, HID)
    w34 = w34.astype(jnp.float32)
    b34 = (jnp.dot(params["b3"], params["w4"], precision=_HIGHEST)
           + params["b4"]).reshape(1, 1).astype(jnp.float32)

    weight_bytes = (IN_DIM * HID * 2 + HID * 4 + HID * HID * 2
                    + HID * 4 + HID * 4 + 4)
    cost = pl.CostEstimate(
        flops=2 * B_pad * (IN_DIM * HID + HID * HID + HID),
        transcendentals=B_pad,
        bytes_accessed=B_pad * (IN_DIM * 4 + 4) + weight_bytes,
    )

    out = pl.pallas_call(
        _disc_kernel,
        out_shape=jax.ShapeDtypeStruct((B_pad, 1), jnp.float32),
        grid=grid,
        in_specs=[
            pl.BlockSpec((TB, IN_DIM), lambda i: (i, 0)),        # x tile (streamed)
            pl.BlockSpec((IN_DIM, HID), lambda i: (0, 0)),       # w1 (VMEM resident)
            pl.BlockSpec((1, HID), lambda i: (0, 0)),            # b1
            pl.BlockSpec((HID, HID), lambda i: (0, 0)),          # w2
            pl.BlockSpec((1, HID), lambda i: (0, 0)),            # b2
            pl.BlockSpec((1, HID), lambda i: (0, 0)),            # folded w3@w4 row
            pl.BlockSpec(memory_space=pltpu.MemorySpace.SMEM),   # folded scalar bias
        ],
        out_specs=pl.BlockSpec((TB, 1), lambda i: (i, 0)),       # (TB,1) column
        compiler_params=pltpu.CompilerParams(
            dimension_semantics=("parallel",),
            vmem_limit_bytes=32 * 1024 * 1024,
        ),
        cost_estimate=cost,
    )(x, w1, b1, w2, b2, w34, b34)

    return out[:B]


def init_params(key):
    """Deterministic init mimicking PyTorch nn.Linear default (U[-1/sqrt(fan_in), +])."""
    def linear(k, fan_in, fan_out):
        kw, kb = jax.random.split(k)
        bound = 1.0 / jnp.sqrt(jnp.float32(fan_in))
        w = jax.random.uniform(kw, (fan_in, fan_out), jnp.float32, -bound, bound)
        b = jax.random.uniform(kb, (1, fan_out), jnp.float32, -bound, bound)
        return w, b

    k1, k2, k3, k4 = jax.random.split(key, 4)
    w1, b1 = linear(k1, IN_DIM, HID)
    w2, b2 = linear(k2, HID, HID)
    w3, b3 = linear(k3, HID, HID)
    w4, b4 = linear(k4, HID, 1)
    return dict(w1=w1, b1=b1, w2=w2, b2=b2, w3=w3, b3=b3, w4=w4, b4=b4)


def reference_forward(x, p):
    """Pure-JAX reference (eval-mode PyTorch semantics).

    Mirrors the kernel's bf16 rounding of the MXU operands (x, w1, h, w2) so the
    comparison stays tight; remaining differences are MXU accumulation order,
    the offline w3@w4 fold, and the approximate reciprocal in the sigmoid.
    """
    xq = x.astype(jnp.bfloat16).astype(jnp.float32)
    w1q = p["w1"].astype(jnp.bfloat16).astype(jnp.float32)
    h = jnp.dot(xq, w1q, precision=_HIGHEST) + p["b1"]
    h = jnp.where(h > 0, h, 0.2 * h)
    hq = h.astype(jnp.bfloat16).astype(jnp.float32)
    w2q = p["w2"].astype(jnp.bfloat16).astype(jnp.float32)
    h = jnp.dot(hq, w2q, precision=_HIGHEST) + p["b2"]
    h = jnp.where(h > 0, h, 0.2 * h)
    h = jnp.dot(h, p["w3"], precision=_HIGHEST) + p["b3"]
    logit = jnp.dot(h, p["w4"], precision=_HIGHEST) + p["b4"]
    return jax.nn.sigmoid(logit)


if __name__ == "__main__":
    key = jax.random.PRNGKey(0)
    kp, kx = jax.random.split(key)
    params = init_params(kp)

    B = 8
    x = jax.random.normal(kx, (B, IN_DIM), dtype=jnp.float32)

    out = jax.block_until_ready(discriminator_forward(x, params))
    ref = reference_forward(x, params)

    assert out.shape == (B, 1)
    # Tolerance sized for bf16 MXU operands, the offline w3@w4 fold and the
    # EUP approximate reciprocal in the sigmoid.
    assert jnp.allclose(out, ref, atol=2e-3, rtol=2e-3), "mismatch vs reference"

    print("KERNEL_OK")
</pallas_src>

<mosaic_0001>
module attributes {stable_mosaic.version = 11 : i64} {
  func.func @_disc_kernel(%arg0: i32, %arg1: memref<128x9xf32, #tpu.memory_space<vmem>>, %arg2: memref<9x128xbf16, #tpu.memory_space<vmem>>, %arg3: memref<1x128xf32, #tpu.memory_space<vmem>>, %arg4: memref<128x128xbf16, #tpu.memory_space<vmem>>, %arg5: memref<1x128xf32, #tpu.memory_space<vmem>>, %arg6: memref<1x128xf32, #tpu.memory_space<vmem>>, %arg7: memref<1x1xf32, #tpu.memory_space<smem>>, %arg8: memref<128x1xf32, #tpu.memory_space<vmem>>) attributes {dimension_semantics = [#tpu.dimension_semantics<parallel>], iteration_bounds = array<i64: 1>, scalar_prefetch = 0 : i64, scratch_operands = 0 : i64, tpu.core_type = #tpu.core_type<tc>, window_params = [{transform_indices = @transform_0, window_bounds = array<i64: 128, 9>}, {pipeline_mode = #tpu.pipeline_mode<synchronous>, transform_indices = @transform_1, window_bounds = array<i64: 9, 128>}, {pipeline_mode = #tpu.pipeline_mode<synchronous>, transform_indices = @transform_2, window_bounds = array<i64: 1, 128>}, {pipeline_mode = #tpu.pipeline_mode<synchronous>, transform_indices = @transform_3, window_bounds = array<i64: 128, 128>}, {pipeline_mode = #tpu.pipeline_mode<synchronous>, transform_indices = @transform_4, window_bounds = array<i64: 1, 128>}, {pipeline_mode = #tpu.pipeline_mode<synchronous>, transform_indices = @transform_5, window_bounds = array<i64: 1, 128>}, {transform_indices = @transform_6, window_bounds = array<i64: 1, 1>}, {transform_indices = @transform_7, window_bounds = array<i64: 128, 1>}]} {
    %c0 = arith.constant 0 : index
    %c0_0 = arith.constant 0 : index
    %0 = vector.load %arg1[%c0, %c0_0] : memref<128x9xf32, #tpu.memory_space<vmem>>, vector<128x9xf32>
    %1 = arith.truncf %0 : vector<128x9xf32> to vector<128x9xbf16>
    %c0_1 = arith.constant 0 : index
    %c0_2 = arith.constant 0 : index
    %2 = vector.load %arg2[%c0_1, %c0_2] : memref<9x128xbf16, #tpu.memory_space<vmem>>, vector<9x128xbf16>
    %cst = arith.constant dense<0.000000e+00> : vector<128x128xf32>
    %3 = tpu.matmul %1, %2, %cst {dimension_numbers = #tpu.dot_dimension_numbers<[1], [0], [0], [1], [0, 0, 1, 1], [], []>} : vector<128x9xbf16>, vector<9x128xbf16>, vector<128x128xf32> -> vector<128x128xf32>
    %c0_3 = arith.constant 0 : index
    %c0_4 = arith.constant 0 : index
    %4 = vector.load %arg3[%c0_3, %c0_4] : memref<1x128xf32, #tpu.memory_space<vmem>>, vector<1x128xf32>
    %5 = vector.broadcast %4 : vector<1x128xf32> to vector<128x128xf32>
    %6 = arith.addf %3, %5 : vector<128x128xf32>
    %cst_5 = arith.constant 2.000000e-01 : f32
    %7 = vector.broadcast %cst_5 : f32 to vector<128x128xf32>
    %8 = arith.mulf %7, %6 : vector<128x128xf32>
    %9 = arith.maximumf %6, %8 : vector<128x128xf32>
    %10 = arith.truncf %9 : vector<128x128xf32> to vector<128x128xbf16>
    %c0_6 = arith.constant 0 : index
    %c0_7 = arith.constant 0 : index
    %11 = vector.load %arg4[%c0_6, %c0_7] : memref<128x128xbf16, #tpu.memory_space<vmem>>, vector<128x128xbf16>
    %cst_8 = arith.constant dense<0.000000e+00> : vector<128x128xf32>
    %12 = tpu.matmul %10, %11, %cst_8 {dimension_numbers = #tpu.dot_dimension_numbers<[1], [0], [0], [1], [0, 0, 1, 1], [], []>} : vector<128x128xbf16>, vector<128x128xbf16>, vector<128x128xf32> -> vector<128x128xf32>
    %c0_9 = arith.constant 0 : index
    %c0_10 = arith.constant 0 : index
    %13 = vector.load %arg5[%c0_9, %c0_10] : memref<1x128xf32, #tpu.memory_space<vmem>>, vector<1x128xf32>
    %14 = vector.broadcast %13 : vector<1x128xf32> to vector<128x128xf32>
    %15 = arith.addf %12, %14 : vector<128x128xf32>
    %cst_11 = arith.constant 2.000000e-01 : f32
    %16 = vector.broadcast %cst_11 : f32 to vector<128x128xf32>
    %17 = arith.mulf %16, %15 : vector<128x128xf32>
    %18 = arith.maximumf %15, %17 : vector<128x128xf32>
    %c0_12 = arith.constant 0 : index
    %c0_13 = arith.constant 0 : index
    %19 = vector.load %arg6[%c0_12, %c0_13] : memref<1x128xf32, #tpu.memory_space<vmem>>, vector<1x128xf32>
    %20 = vector.broadcast %19 : vector<1x128xf32> to vector<128x128xf32>
    %21 = arith.mulf %18, %20 : vector<128x128xf32>
    %cst_14 = arith.constant dense<0.000000e+00> : vector<128xf32>
    %22 = vector.multi_reduction <add>, %21, %cst_14 [1] : vector<128x128xf32> to vector<128xf32>
    %23 = vector.shape_cast %22 : vector<128xf32> to vector<128x1xf32>
    %c0_15 = arith.constant 0 : index
    %c0_16 = arith.constant 0 : index
    %24 = memref.load %arg7[%c0_15, %c0_16] : memref<1x1xf32, #tpu.memory_space<smem>>
    %25 = vector.broadcast %24 : f32 to vector<128x1xf32>
    %26 = arith.addf %23, %25 : vector<128x1xf32>
    %cst_17 = arith.constant 0.000000e+00 : f32
    %27 = vector.broadcast %cst_17 : f32 to vector<128x1xf32>
    %28 = arith.subf %27, %26 : vector<128x1xf32>
    %29 = math.exp %28 : vector<128x1xf32>
    %cst_18 = arith.constant 1.000000e+00 : f32
    %30 = vector.broadcast %cst_18 : f32 to vector<128x1xf32>
    %31 = arith.addf %30, %29 : vector<128x1xf32>
    %32 = tpu.reciprocal %31 {approx = true} : vector<128x1xf32> -> vector<128x1xf32>
    %c0_19 = arith.constant 0 : index
    %c0_20 = arith.constant 0 : index
    %33 = vector.load %arg8[%c0_19, %c0_20] : memref<128x1xf32, #tpu.memory_space<vmem>>, vector<128x1xf32>
    tpu.vector_store %arg8[%c0_19, %c0_20], %32 {strides = array<i32>} : memref<128x1xf32, #tpu.memory_space<vmem>>, vector<128x1xf32>,
    return
  }
  func.func @transform_0(%arg0: i32) -> (i32, i32) {
    %c0_i32 = arith.constant 0 : i32
    %c0_i32_0 = arith.constant 0 : i32
    return %arg0, %c0_i32 : i32, i32
  }
  func.func @transform_1(%arg0: i32) -> (i32, i32) {
    %c0_i32 = arith.constant 0 : i32
    %c0_i32_0 = arith.constant 0 : i32
    %c0_i32_1 = arith.constant 0 : i32
    return %c0_i32, %c0_i32_0 : i32, i32
  }
  func.func @transform_2(%arg0: i32) -> (i32, i32) {
    %c0_i32 = arith.constant 0 : i32
    %c0_i32_0 = arith.constant 0 : i32
    %c0_i32_1 = arith.constant 0 : i32
    return %c0_i32, %c0_i32_0 : i32, i32
  }
  func.func @transform_3(%arg0: i32) -> (i32, i32) {
    %c0_i32 = arith.constant 0 : i32
    %c0_i32_0 = arith.constant 0 : i32
    %c0_i32_1 = arith.constant 0 : i32
    return %c0_i32, %c0_i32_0 : i32, i32
  }
  func.func @transform_4(%arg0: i32) -> (i32, i32) {
    %c0_i32 = arith.constant 0 : i32
    %c0_i32_0 = arith.constant 0 : i32
    %c0_i32_1 = arith.constant 0 : i32
    return %c0_i32, %c0_i32_0 : i32, i32
  }
  func.func @transform_5(%arg0: i32) -> (i32, i32) {
    %c0_i32 = arith.constant 0 : i32
    %c0_i32_0 = arith.constant 0 : i32
    %c0_i32_1 = arith.constant 0 : i32
    return %c0_i32, %c0_i32_0 : i32, i32
  }
  func.func @transform_6(%arg0: i32) -> (i32, i32) {
    %c0_i32 = arith.constant 0 : i32
    %c0_i32_0 = arith.constant 0 : i32
    %c0_i32_1 = arith.constant 0 : i32
    return %c0_i32, %c0_i32_0 : i32, i32
  }
  func.func @transform_7(%arg0: i32) -> (i32, i32) {
    %c0_i32 = arith.constant 0 : i32
    %c0_i32_0 = arith.constant 0 : i32
    return %arg0, %c0_i32 : i32, i32
  }
}

</mosaic_0001>

<bundles_post_ra>
// kernel: tpu_custom_call.1
= control target key start
LH: loop header
LB: loop body
LE: loop exit
PB: predicated region body
PF: predicated region fallthrough
CT: control target
= control target key end

     0   :  { %vm91_vm0 = vcmask 1043456   ;;  %vm92_vm1 = vcmask 1044480   ;;  %v794_v1 = vmov 65535   ;;  %vm66_vm2 = vcmask 72704   ;;  %s1066_s1 = inlined_call_operand.vmem [shape: bf16[9,128], index: 1, kind: input, shape index: {}]   ;;  %s1067_s0 = inlined_call_operand.vmem [shape: f32[128,9], index: 0, kind: input, shape index: {}]   ;;  %s1068_s3 = inlined_call_operand.vmem [shape: bf16[128,128], index: 3, kind: input, shape index: {}]   ;;  %s1069_s2 = inlined_call_operand.vmem [shape: f32[1,128], index: 2, kind: input, shape index: {}]   ;;  %s1070_s4 = inlined_call_operand.vmem [shape: f32[1,128], index: 4, kind: input, shape index: {}]   ;;  %s1071_s5 = inlined_call_operand.vmem [shape: f32[1,128], index: 5, kind: input, shape index: {}]   ;;  %s1072_s6 = inlined_call_operand.<no memory space> [shape: f32[1,1], index: 6, kind: input, shape index: {}]   ;;  %s1073_s7 = inlined_call_operand.vmem [shape: f32[128,1], index: 7, kind: output, shape index: {}]  }
   0x1   :  { %v721_v0 = vld [vmem:[%s1066_s1] sm:$0x1f]   ;;  %v93_v2 = vsel %vm91_vm0, 4294967295, %v794_v1  ;;  %v29_v4 = vld [vmem:[%s1067_s0 + $0x8] sm:$0xff]  ;;  %v30_v7 = vld [vmem:[%s1067_s0 + $0x10] sm:$0xff]  ;;  %vm588_vm3 = vcmask 7168  }
   0x2   :  { %v28_v3 = vld [vmem:[%s1067_s0] sm:$0xff]  ;;  %v94_v5 = vsel %vm92_vm1, %v93_v2, 0  ;;  %v31_v8 = vld [vmem:[%s1067_s0 + $0x18] sm:$0xff]  ;;  %v33_v11 = vld [vmem:[%s1067_s0 + $0x28] sm:$0xff] }
   0x3   :  { %v44_v6 = vpack.c.bf16 %v29_v4, %v28_v3  ;;  %v96_v9 = vand.u32 %v721_v0, %v94_v5  ;;  %v32_v10 = vld [vmem:[%s1067_s0 + $0x20] sm:$0xff]  ;;  %v45_v12 = vpack.c.bf16 %v31_v8, %v30_v7  ;;  %v34_v15 = vld [vmem:[%s1067_s0 + $0x30] sm:$0xff]  ;;  %v35_v16 = vld [vmem:[%s1067_s0 + $0x38] sm:$0xff] }
   0x4   :  { %v46_v13 = vpack.c.bf16 %v33_v11, %v32_v10  ;;  %v722_v14 = vld [vmem:[%s1068_s3] sm:$0xff]   ;;  %v723_v17 = vld [vmem:[%s1068_s3 + $0x8] sm:$0xff]   ;;  %v724_v20 = vld [vmem:[%s1068_s3 + $0x10] sm:$0xff]   ;;  %v47_v21 = vpack.c.bf16 %v35_v16, %v34_v15 }
   0x5   :  { %656 = vmatprep.mubr.msk.bf16.mxu0 %vm66_vm2, %v44_v6  ;;  %654 = vmatprep.subr.bf16.mxu0 %v96_v9  ;;  %v36_v18 = vld [vmem:[%s1067_s0 + $0x40] sm:$0xff]  ;;  %v37_v19 = vld [vmem:[%s1067_s0 + $0x48] sm:$0xff]  ;;  %v725_v23 = vld [vmem:[%s1068_s3 + $0x18] sm:$0xff]  }
   0x6   :  { %655 = vmatpush3.bf16.msra.mxu0 %v96_v9  ;;  %704 = vmatprep.subr.bf16.mxu1 %v722_v14  ;;  %v48_v22 = vpack.c.bf16 %v37_v19, %v36_v18  ;;  %v38_v24 = vld [vmem:[%s1067_s0 + $0x50] sm:$0xff]  ;;  %v39_v25 = vld [vmem:[%s1067_s0 + $0x58] sm:$0xff]  ;;  %v40_v26 = vld [vmem:[%s1067_s0 + $0x60] sm:$0xff] }
   0x7   :  { %672 = vmatprep.subr.bf16.mxu0 %v722_v14  ;;  %712 = vmatpush3.bf16.msra.mxu1 %v722_v14  ;;  %v41_v27 = vld [vmem:[%s1067_s0 + $0x68] sm:$0xff]  ;;  %v726_v28 = vld [vmem:[%s1068_s3 + $0x20] sm:$0xff]   ;;  %v49_v29 = vpack.c.bf16 %v39_v25, %v38_v24  ;;  %v42_v31 = vld [vmem:[%s1067_s0 + $0x70] sm:$0xff] }
   0x8   :  { %705 = vmatprep.subr.bf16.mxu1 %v723_v17  ;;  %v50_v30 = vpack.c.bf16 %v41_v27, %v40_v26  ;;  %v43_v32 = vld [vmem:[%s1067_s0 + $0x78] sm:$0xff]  ;;  %v727_v34 = vld [vmem:[%s1068_s3 + $0x28] sm:$0xff]   ;;  %v728_v35 = vld [vmem:[%s1068_s3 + $0x30] sm:$0xff]  }
   0x9   :  { %657 = vmatmul.mubr.msk.bf16.vlgmr.msra.gmra.mrb[0].mxu0 %vm66_vm2, %v45_v12  ;;  %v51_v33 = vpack.c.bf16 %v43_v32, %v42_v31  ;;  %v729_v36 = vld [vmem:[%s1068_s3 + $0x38] sm:$0xff]   ;;  %v921_v37 = vld [vmem:[%s1069_s2] ss:$0 sm:$0xff] }
   0xa   :  { %660 = vmatprep.mubr.msk.bf16.mxu0 %vm66_vm2, %v46_v13  ;;  %673 = vmatpush3.bf16.msra.mxu0 %v722_v14 }
   0xb   :  { %674 = vmatprep.subr.bf16.mxu0 %v723_v17  ;;  %713 = vmatpush3.bf16.msra.mxu1 %v723_v17 }
   0xc   :  { %706 = vmatprep.subr.bf16.mxu1 %v724_v20 }
   0xe   :  { %675 = vmatpush3.bf16.msra.mxu0 %v723_v17 }
   0xf   :  { %676 = vmatprep.subr.bf16.mxu0 %v724_v20  ;;  %714 = vmatpush3.bf16.msra.mxu1 %v724_v20 }
  0x10   :  { %707 = vmatprep.subr.bf16.mxu1 %v725_v23 }
  0x11   :  { %661 = vmatmul.mubr.msk.bf16.gmra.mrb[4].mxu0 %vm66_vm2, %v47_v21 }
  0x12   :  { %664 = vmatprep.mubr.msk.bf16.mxu0 %vm66_vm2, %v48_v22  ;;  %677 = vmatpush3.bf16.msra.mxu0 %v724_v20 }
  0x13   :  { %678 = vmatprep.subr.bf16.mxu0 %v725_v23  ;;  %715 = vmatpush3.bf16.msra.mxu1 %v725_v23 }
  0x14   :  { %708 = vmatprep.subr.bf16.mxu1 %v726_v28 }
  0x16   :  { %679 = vmatpush3.bf16.msra.mxu0 %v725_v23 }
  0x17   :  { %680 = vmatprep.subr.bf16.mxu0 %v726_v28  ;;  %716 = vmatpush3.bf16.msra.mxu1 %v726_v28 }
  0x18   :  { %709 = vmatprep.subr.bf16.mxu1 %v727_v34 }
  0x19   :  { %665 = vmatmul.mubr.msk.bf16.gmra.mrb[8].mxu0 %vm66_vm2, %v49_v29 }
  0x1a   :  { %668 = vmatprep.mubr.msk.bf16.mxu0 %vm66_vm2, %v50_v30  ;;  %681 = vmatpush3.bf16.msra.mxu0 %v726_v28 }
  0x1b   :  { %682 = vmatprep.subr.bf16.mxu0 %v727_v34  ;;  %717 = vmatpush3.bf16.msra.mxu1 %v727_v34 }
  0x1c   :  { %710 = vmatprep.subr.bf16.mxu1 %v728_v35 }
  0x1e   :  { %683 = vmatpush3.bf16.msra.mxu0 %v727_v34 }
  0x1f   :  { %684 = vmatprep.subr.bf16.mxu0 %v728_v35  ;;  %718 = vmatpush3.bf16.msra.mxu1 %v728_v35 }
  0x20   :  { %711 = vmatprep.subr.bf16.mxu1 %v729_v36 }
  0x21   :  { %669 = vmatmul.mubr.msk.bf16.gmra.mrb[12].mxu0 %vm66_vm2, %v51_v33 }
  0x22   :  { %685 = vmatpush3.bf16.msra.mxu0 %v728_v35 }
  0x23   :  { %686 = vmatprep.subr.bf16.mxu0 %v729_v36  ;;  %719 = vmatpush3.bf16.msra.mxu1 %v729_v36 }
  0x26   :  { %687 = vmatpush3.bf16.msra.mxu0 %v729_v36 }
  0xdc   :  { %v658_v38 = vpop.f32.mrb[0].mxu0 }
  0xdd   :  { %v141_v39 = vadd.f32 %v658_v38, %v921_v37  ;;  %v132_v40 = vpop.f32.mrb[1].mxu0 }
  0xde   :  { %v133_v41 = vadd.f32 %v921_v37, %v132_v40  ;;  %v659_v42 = vpop.f32.mrb[2].mxu0 }
  0xdf   :  { %v197_v43 = vmul.f32 0.2, %v141_v39  ;;  %v144_v44 = vadd.f32 %v659_v42, %v921_v37  ;;  %v135_v45 = vpop.f32.mrb[3].mxu0 }
  0xe0   :  { %v195_v46 = vmul.f32 0.2, %v133_v41  ;;  %v136_v47 = vadd.f32 %v921_v37, %v135_v45 }
  0xe1   :  { %v198_v48 = vmul.f32 0.2, %v144_v44  ;;  %v213_v50 = vmax.f32 %v141_v39, %v197_v43 }
  0xe2   :  { %v196_v49 = vmul.f32 0.2, %v136_v47  ;;  %v211_v52 = vmax.f32 %v133_v41, %v195_v46 }
  0xe3   :  { %v214_v51 = vmax.f32 %v144_v44, %v198_v48 }
  0xe4   :  { %v212_v53 = vmax.f32 %v136_v47, %v196_v49  ;;  %v662_v54 = vpop.f32.mrb[4].mxu0  ;;  %v942_v47 = vld [vmem:[%s1070_s4] ss:$0 sm:$0xff] }
  0xe5   :  { %v228_v55 = vpack.c.bf16 %v214_v51, %v213_v50  ;;  %v157_v56 = vadd.f32 %v662_v54, %v921_v37  ;;  %v148_v57 = vpop.f32.mrb[5].mxu0 }
  0xe6   :  { %v149_v58 = vadd.f32 %v921_v37, %v148_v57  ;;  %v663_v59 = vpop.f32.mrb[6].mxu0  ;;  %v227_v60 = vpack.c.bf16 %v212_v53, %v211_v52  ;;  %v951_v57 = vld [vmem:[%s1071_s5] ss:$0 sm:$0xff] }
  0xe7   :  { %v201_v61 = vmul.f32 0.2, %v157_v56  ;;  %v160_v62 = vadd.f32 %v663_v59, %v921_v37  ;;  %v151_v63 = vpop.f32.mrb[7].mxu0 }
  0xe8   :  { %v199_v0 = vmul.f32 0.2, %v149_v58  ;;  %v152_v1 = vadd.f32 %v921_v37, %v151_v63  ;;  %688 = vmatprep.mubr.bf16.mxu0 %v227_v60 }
  0xe9   :  { %v202_v2 = vmul.f32 0.2, %v160_v62  ;;  %689 = vmatmul.mubr.bf16.vlgmr.msra.gmra.mrb[16].mxu0 %v228_v55  ;;  %v217_v4 = vmax.f32 %v157_v56, %v201_v61 }
  0xea   :  { %v200_v3 = vmul.f32 0.2, %v152_v1  ;;  %v215_v7 = vmax.f32 %v149_v58, %v199_v0 }
  0xeb   :  { %v218_v5 = vmax.f32 %v160_v62, %v202_v2 }
  0xec   :  { %v666_v6 = vpop.f32.mrb[8].mxu0  ;;  %v216_v8 = vmax.f32 %v152_v1, %v200_v3 }
  0xed   :  { %v173_v9 = vadd.f32 %v666_v6, %v921_v37  ;;  %v164_v10 = vpop.f32.mrb[9].mxu0  ;;  %v230_v11 = vpack.c.bf16 %v218_v5, %v217_v4 }
  0xee   :  { %v165_v12 = vadd.f32 %v921_v37, %v164_v10  ;;  %v667_v13 = vpop.f32.mrb[10].mxu0  ;;  %v229_v14 = vpack.c.bf16 %v216_v8, %v215_v7 }
  0xef   :  { %v205_v15 = vmul.f32 0.2, %v173_v9  ;;  %v176_v16 = vadd.f32 %v667_v13, %v921_v37  ;;  %v167_v17 = vpop.f32.mrb[11].mxu0 }
  0xf0   :  { %v203_v18 = vmul.f32 0.2, %v165_v12  ;;  %v168_v19 = vadd.f32 %v921_v37, %v167_v17  ;;  %692 = vmatprep.mubr.bf16.mxu1 %v229_v14 }
  0xf1   :  { %v206_v20 = vmul.f32 0.2, %v176_v16  ;;  %693 = vmatmul.mubr.bf16.vlgmr.msra.gmra.mrb[0].mxu1 %v230_v11  ;;  %v221_v22 = vmax.f32 %v173_v9, %v205_v15 }
  0xf2   :  { %v204_v21 = vmul.f32 0.2, %v168_v19  ;;  %v219_v24 = vmax.f32 %v165_v12, %v203_v18 }
  0xf3   :  { %v222_v23 = vmax.f32 %v176_v16, %v206_v20 }
  0xf4   :  { %v220_v25 = vmax.f32 %v168_v19, %v204_v21  ;;  %v670_v26 = vpop.f32.mrb[12].mxu0 }
  0xf5   :  { %v189_v27 = vadd.f32 %v670_v26, %v921_v37  ;;  %v180_v28 = vpop.f32.mrb[13].mxu0  ;;  %v232_v29 = vpack.c.bf16 %v222_v23, %v221_v22 }
  0xf6   :  { %v181_v30 = vadd.f32 %v921_v37, %v180_v28  ;;  %v671_v31 = vpop.f32.mrb[14].mxu0  ;;  %v231_v32 = vpack.c.bf16 %v220_v25, %v219_v24 }
  0xf7   :  { %v209_v33 = vmul.f32 0.2, %v189_v27  ;;  %v192_v34 = vadd.f32 %v671_v31, %v921_v37  ;;  %v183_v35 = vpop.f32.mrb[15].mxu0 }
  0xf8   :  { %v207_v36 = vmul.f32 0.2, %v181_v30  ;;  %v184_v38 = vadd.f32 %v921_v37, %v183_v35  ;;  %696 = vmatprep.mubr.bf16.mxu1 %v231_v32 }
  0xf9   :  { %v210_v39 = vmul.f32 0.2, %v192_v34  ;;  %697 = vmatmul.mubr.bf16.gmra.mrb[4].mxu1 %v232_v29  ;;  %v225_v41 = vmax.f32 %v189_v27, %v209_v33 }
  0xfa   :  { %v208_v40 = vmul.f32 0.2, %v184_v38  ;;  %v223_v43 = vmax.f32 %v181_v30, %v207_v36 }
  0xfb   :  { %v226_v42 = vmax.f32 %v192_v34, %v210_v39 }
  0xfc   :  { %v224_v44 = vmax.f32 %v184_v38, %v208_v40 }
  0xfd   :  { %v234_v45 = vpack.c.bf16 %v226_v42, %v225_v41 }
  0xfe   :  { %v233_v46 = vpack.c.bf16 %v224_v44, %v223_v43 }
 0x100   :  { %700 = vmatprep.mubr.bf16.mxu1 %v233_v46 }
 0x101   :  { %701 = vmatmul.mubr.bf16.gmra.mrb[8].mxu1 %v234_v45 }
 0x1bc   :  { %v690_v48 = vpop.f32.mrb[16].mxu0 }
 0x1bd   :  { %v349_v37 = vadd.f32 %v690_v48, %v942_v47  ;;  %v340_v49 = vpop.f32.mrb[17].mxu0 }
 0x1be   :  { %v341_v50 = vadd.f32 %v942_v47, %v340_v49  ;;  %v691_v51 = vpop.f32.mrb[18].mxu0 }
 0x1bf   :  { %v405_v52 = vmul.f32 0.2, %v349_v37  ;;  %v352_v53 = vadd.f32 %v691_v51, %v942_v47  ;;  %v343_v54 = vpop.f32.mrb[19].mxu0 }
 0x1c0   :  { %v403_v55 = vmul.f32 0.2, %v341_v50  ;;  %v344_v56 = vadd.f32 %v942_v47, %v343_v54 }
 0x1c1   :  { %v406_v58 = vmul.f32 0.2, %v352_v53  ;;  %v421_v59 = vmax.f32 %v349_v37, %v405_v52 }
 0x1c2   :  { %v404_v60 = vmul.f32 0.2, %v344_v56  ;;  %v419_v61 = vmax.f32 %v341_v50, %v403_v55 }
 0x1c3   :  { %v422_v62 = vmax.f32 %v352_v53, %v406_v58  ;;  %v444_v63 = vmul.f32 %v951_v57, %v421_v59 }
 0x1c4   :  { %v420_v0 = vmax.f32 %v344_v56, %v404_v60  ;;  %v694_v1 = vpop.f32.mrb[0].mxu1  ;;  %v442_v2 = vmul.f32 %v951_v57, %v419_v61 }
 0x1c5   :  { %v365_v3 = vadd.f32 %v694_v1, %v942_v47  ;;  %v356_v4 = vpop.f32.mrb[1].mxu1  ;;  %462 = vadd.xlane.f32.xlu1 %v444_v63  ;;  %v445_v10 = vmul.f32 %v951_v57, %v422_v62  ;;  %v984_v1 = vstv %s1072_s6 }
 0x1c6   :  { %v357_v5 = vadd.f32 %v942_v47, %v356_v4  ;;  %v695_v6 = vpop.f32.mrb[2].mxu1  ;;  %458 = vadd.xlane.f32.xlu0 %v442_v2  ;;  %v443_v13 = vmul.f32 %v951_v57, %v420_v0 }
 0x1c7   :  { %v409_v7 = vmul.f32 0.2, %v365_v3  ;;  %v368_v8 = vadd.f32 %v695_v6, %v942_v47  ;;  %v359_v9 = vpop.f32.mrb[3].mxu1 }
 0x1c8   :  { %v407_v11 = vmul.f32 0.2, %v357_v5  ;;  %v360_v12 = vadd.f32 %v942_v47, %v359_v9 }
 0x1c9   :  { %v425_v14 = vmax.f32 %v365_v3, %v409_v7  ;;  %v410_v15 = vmul.f32 0.2, %v368_v8  ;;  %464 = vadd.xlane.f32.xlu1 %v445_v10 }
 0x1ca   :  { %v408_v16 = vmul.f32 0.2, %v360_v12  ;;  %460 = vadd.xlane.f32.xlu0 %v443_v13  ;;  %v423_v19 = vmax.f32 %v357_v5, %v407_v11 }
 0x1cb   :  { %v426_v17 = vmax.f32 %v368_v8, %v410_v15  ;;  %v448_v18 = vmul.f32 %v951_v57, %v425_v14 }
 0x1cc   :  { %v698_v20 = vpop.f32.mrb[4].mxu1  ;;  %v424_v21 = vmax.f32 %v360_v12, %v408_v16  ;;  %v446_v32 = vmul.f32 %v951_v57, %v423_v19 }
 0x1cd   :  { %v381_v22 = vadd.f32 %v698_v20, %v942_v47  ;;  %v372_v23 = vpop.f32.mrb[5].mxu1  ;;  %v449_v24 = vmul.f32 %v951_v57, %v426_v17 }
 0x1ce   :  { %v373_v25 = vadd.f32 %v942_v47, %v372_v23  ;;  %v699_v26 = vpop.f32.mrb[6].mxu1  ;;  %470 = vadd.xlane.f32.xlu0 %v448_v18  ;;  %v447_v35 = vmul.f32 %v951_v57, %v424_v21 }
 0x1cf   :  { %v413_v27 = vmul.f32 0.2, %v381_v22  ;;  %v384_v28 = vadd.f32 %v699_v26, %v942_v47  ;;  %v375_v29 = vpop.f32.mrb[7].mxu1  ;;  %472 = vadd.xlane.f32.xlu1 %v449_v24 }
 0x1d0   :  { %v411_v30 = vmul.f32 0.2, %v373_v25  ;;  %v376_v31 = vadd.f32 %v942_v47, %v375_v29 }
 0x1d1   :  { %v429_v33 = vmax.f32 %v381_v22, %v413_v27  ;;  %v414_v34 = vmul.f32 0.2, %v384_v28 }
 0x1d2   :  { %v412_v36 = vmul.f32 0.2, %v376_v31  ;;  %466 = vadd.xlane.f32.xlu0 %v446_v32  ;;  %v427_v40 = vmax.f32 %v373_v25, %v411_v30 }
 0x1d3   :  { %v430_v38 = vmax.f32 %v384_v28, %v414_v34  ;;  %468 = vadd.xlane.f32.xlu1 %v447_v35  ;;  %v452_v39 = vmul.f32 %v951_v57, %v429_v33 }
 0x1d4   :  { %v702_v41 = vpop.f32.mrb[8].mxu1  ;;  %v428_v42 = vmax.f32 %v376_v31, %v412_v36  ;;  %v450_v53 = vmul.f32 %v951_v57, %v427_v40 }
 0x1d5   :  { %v397_v43 = vadd.f32 %v702_v41, %v942_v47  ;;  %v388_v44 = vpop.f32.mrb[9].mxu1  ;;  %v453_v45 = vmul.f32 %v951_v57, %v430_v38 }
 0x1d6   :  { %v389_v46 = vadd.f32 %v942_v47, %v388_v44  ;;  %v703_v48 = vpop.f32.mrb[10].mxu1  ;;  %478 = vadd.xlane.f32.xlu0 %v452_v39  ;;  %v451_v54 = vmul.f32 %v951_v57, %v428_v42 }
 0x1d7   :  { %v400_v37 = vadd.f32 %v703_v48, %v942_v47  ;;  %v391_v49 = vpop.f32.mrb[11].mxu1  ;;  %480 = vadd.xlane.f32.xlu1 %v453_v45  ;;  %v417_v50 = vmul.f32 0.2, %v397_v43 }
 0x1d8   :  { %v415_v51 = vmul.f32 0.2, %v389_v46  ;;  %v392_v52 = vadd.f32 %v942_v47, %v391_v49 }
 0x1d9   :  { %v418_v56 = vmul.f32 0.2, %v400_v37  ;;  %v433_v59 = vmax.f32 %v397_v43, %v417_v50 }
 0x1da   :  { %v431_v55 = vmax.f32 %v389_v46, %v415_v51  ;;  %v416_v58 = vmul.f32 0.2, %v392_v52  ;;  %474 = vadd.xlane.f32.xlu0 %v450_v53 }
 0x1db   :  { %476 = vadd.xlane.f32.xlu1 %v451_v54  ;;  %v434_v62 = vmax.f32 %v400_v37, %v418_v56  ;;  %v456_v47 = vmul.f32 %v951_v57, %v433_v59 }
 0x1dc   :  { %v432_v60 = vmax.f32 %v392_v52, %v416_v58  ;;  %v454_v61 = vmul.f32 %v951_v57, %v431_v55 }
 0x1dd   :  { %v457_v0 = vmul.f32 %v951_v57, %v434_v62 }
 0x1de   :  { %482 = vadd.xlane.f32.xlu0 %v454_v61  ;;  %v455_v63 = vmul.f32 %v951_v57, %v432_v60 }
 0x1e0   :  { %484 = vadd.xlane.f32.xlu1 %v455_v63 }
 0x1e2   :  { %486 = vadd.xlane.f32.xlu0 %v456_v47 }
 0x1e4   :  { %488 = vadd.xlane.f32.xlu1 %v457_v0 }
 0x252   :  { %v463_v2 = vpop.xlane.xlu1 %462 }
 0x253   :  { %v494_v3 = vadd.f32 %v984_v1, %v463_v2  ;;  %v459_v4 = vpop.xlane.xlu0 %458 }
 0x254   :  { %v492_v5 = vadd.f32 %v984_v1, %v459_v4 }
 0x255   :  { %v510_v6 = vsub.f32 0.0, %v494_v3 }
 0x256   :  { %v508_v7 = vsub.f32 0.0, %v492_v5  ;;  %v465_v8 = vpop.xlane.xlu1 %464 }
 0x257   :  { %v528_v9 = vmul.f32 1.442695, %v510_v6  ;;  %v495_v10 = vadd.f32 %v984_v1, %v465_v8  ;;  %v461_v11 = vpop.xlane.xlu0 %460 }
 0x258   :  { %v524_v57 = vmul.f32 1.442695, %v508_v7  ;;  %v493_v12 = vadd.f32 %v984_v1, %v461_v11 }
 0x259   :  { %730 = vpow2.f32 %v528_v9  ;;  %v511_v13 = vsub.f32 0.0, %v495_v10 }
 0x25a   :  { %732 = vpow2.f32 %v524_v57  ;;  %v509_v14 = vsub.f32 0.0, %v493_v12 }
 0x25b   :  { %v530_v15 = vmul.f32 1.442695, %v511_v13  ;;  %v471_v16 = vpop.xlane.xlu0 %470 }
 0x25c   :  { %v526_v17 = vmul.f32 1.442695, %v509_v14  ;;  %v498_v18 = vadd.f32 %v984_v1, %v471_v16  ;;  %v473_v19 = vpop.xlane.xlu1 %472 }
 0x25d   :  { %734 = vpow2.f32 %v530_v15  ;;  %v499_v20 = vadd.f32 %v984_v1, %v473_v19 }
 0x25e   :  { %736 = vpow2.f32 %v526_v17  ;;  %v514_v21 = vsub.f32 0.0, %v498_v18 }
 0x25f   :  { %v515_v22 = vsub.f32 0.0, %v499_v20  ;;  %v467_v23 = vpop.xlane.xlu0 %466 }
 0x260   :  { %v536_v24 = vmul.f32 1.442695, %v514_v21  ;;  %v496_v25 = vadd.f32 %v984_v1, %v467_v23  ;;  %v469_v26 = vpop.xlane.xlu1 %468 }
 0x261   :  { %v538_v27 = vmul.f32 1.442695, %v515_v22  ;;  %v497_v28 = vadd.f32 %v984_v1, %v469_v26 }
 0x262   :  { %738 = vpow2.f32 %v536_v24  ;;  %v512_v29 = vsub.f32 0.0, %v496_v25 }
 0x263   :  { %v731_v30 = vpop.eup %730  ;;  %740 = vpow2.f32 %v538_v27  ;;  %v513_v31 = vsub.f32 0.0, %v497_v28  ;;  %v479_v32 = vpop.xlane.xlu0 %478 }
 0x264   :  { %v733_v33 = vpop.eup %732  ;;  %v558_v34 = vadd.f32 1.0, %v731_v30  ;;  %v532_v35 = vmul.f32 1.442695, %v512_v29  ;;  %v502_v36 = vadd.f32 %v984_v1, %v479_v32  ;;  %v481_v38 = vpop.xlane.xlu1 %480 }
 0x265   :  { %v556_v39 = vadd.f32 1.0, %v733_v33  ;;  %v534_v40 = vmul.f32 1.442695, %v513_v31  ;;  %v503_v41 = vadd.f32 %v984_v1, %v481_v38 }
 0x266   :  { %742 = vrcp.f32 %v558_v34  ;;  %v518_v42 = vsub.f32 0.0, %v502_v36 }
 0x267   :  { %v735_v43 = vpop.eup %734  ;;  %744 = vrcp.f32 %v556_v39  ;;  %v519_v44 = vsub.f32 0.0, %v503_v41  ;;  %v475_v45 = vpop.xlane.xlu0 %474 }
 0x268   :  { %v737_v46 = vpop.eup %736  ;;  %v559_v48 = vadd.f32 1.0, %v735_v43  ;;  %746 = vpow2.f32 %v532_v35  ;;  %v544_v37 = vmul.f32 1.442695, %v518_v42  ;;  %v500_v49 = vadd.f32 %v984_v1, %v475_v45  ;;  %v477_v50 = vpop.xlane.xlu1 %476 }
 0x269   :  { %v557_v51 = vadd.f32 1.0, %v737_v46  ;;  %748 = vpow2.f32 %v534_v40  ;;  %v546_v52 = vmul.f32 1.442695, %v519_v44  ;;  %v501_v53 = vadd.f32 %v984_v1, %v477_v50 }
 0x26a   :  { %750 = vrcp.f32 %v559_v48  ;;  %v516_v54 = vsub.f32 0.0, %v500_v49 }
 0x26b   :  { %752 = vrcp.f32 %v557_v51  ;;  %v517_v55 = vsub.f32 0.0, %v501_v53  ;;  %v483_v56 = vpop.xlane.xlu0 %482 }
 0x26c   :  { %v739_v58 = vpop.eup %738  ;;  %754 = vpow2.f32 %v544_v37  ;;  %v540_v59 = vmul.f32 1.442695, %v516_v54  ;;  %v504_v60 = vadd.f32 %v984_v1, %v483_v56 }
 0x26d   :  { %v741_v61 = vpop.eup %740  ;;  %v562_v62 = vadd.f32 1.0, %v739_v58  ;;  %756 = vpow2.f32 %v546_v52  ;;  %v542_v63 = vmul.f32 1.442695, %v517_v55  ;;  %v485_v47 = vpop.xlane.xlu1 %484 }
 0x26e   :  { %v563_v0 = vadd.f32 1.0, %v741_v61  ;;  %758 = vpow2.f32 %v540_v59  ;;  %v520_v2 = vsub.f32 0.0, %v504_v60  ;;  %v505_v3 = vadd.f32 %v984_v1, %v485_v47 }
 0x26f   :  { %760 = vrcp.f32 %v562_v62  ;;  %v487_v4 = vpop.xlane.xlu0 %486 }
 0x270   :  { %v743_v5 = vpop.eup %742  ;;  %762 = vrcp.f32 %v563_v0  ;;  %v548_v6 = vmul.f32 1.442695, %v520_v2  ;;  %v521_v7 = vsub.f32 0.0, %v505_v3  ;;  %v506_v8 = vadd.f32 %v984_v1, %v487_v4 }
 0x271   :  { %v745_v9 = vpop.eup %744  ;;  %591 = vst.msk [vmem:[%s1073_s7 + $0x10] sm:$0xff] %vm588_vm3, %v743_v5  ;;  %764 = vpow2.f32 %v542_v63  ;;  %v489_v10 = vpop.xlane.xlu1 %488 }
 0x272   :  { %v747_v11 = vpop.eup %746  ;;  %589 = vst.msk [vmem:[%s1073_s7] sm:$0xff] %vm588_vm3, %v745_v9  ;;  %766 = vpow2.f32 %v548_v6  ;;  %v550_v57 = vmul.f32 1.442695, %v521_v7  ;;  %v522_v12 = vsub.f32 0.0, %v506_v8  ;;  %v507_v13 = vadd.f32 %v984_v1, %v489_v10 }
 0x273   :  { %v749_v14 = vpop.eup %748  ;;  %v560_v15 = vadd.f32 1.0, %v747_v11 }
 0x274   :  { %v751_v16 = vpop.eup %750  ;;  %v561_v17 = vadd.f32 1.0, %v749_v14  ;;  %768 = vpow2.f32 %v550_v57  ;;  %v552_v18 = vmul.f32 1.442695, %v522_v12  ;;  %v523_v19 = vsub.f32 0.0, %v507_v13 }
 0x275   :  { %v753_v20 = vpop.eup %752  ;;  %592 = vst.msk [vmem:[%s1073_s7 + $0x18] sm:$0xff] %vm588_vm3, %v751_v16  ;;  %770 = vrcp.f32 %v560_v15 }
 0x276   :  { %v755_v21 = vpop.eup %754  ;;  %590 = vst.msk [vmem:[%s1073_s7 + $0x8] sm:$0xff] %vm588_vm3, %v753_v20  ;;  %772 = vrcp.f32 %v561_v17  ;;  %v554_v1 = vmul.f32 1.442695, %v523_v19 }
 0x277   :  { %v757_v22 = vpop.eup %756  ;;  %v566_v23 = vadd.f32 1.0, %v755_v21  ;;  %774 = vpow2.f32 %v552_v18 }
 0x278   :  { %v759_v24 = vpop.eup %758  ;;  %v567_v25 = vadd.f32 1.0, %v757_v22  ;;  %776 = vpow2.f32 %v554_v1 }
 0x279   :  { %v761_v26 = vpop.eup %760  ;;  %778 = vrcp.f32 %v566_v23  ;;  %v564_v27 = vadd.f32 1.0, %v759_v24 }
 0x27a   :  { %v763_v28 = vpop.eup %762  ;;  %595 = vst.msk [vmem:[%s1073_s7 + $0x30] sm:$0xff] %vm588_vm3, %v761_v26  ;;  %780 = vrcp.f32 %v567_v25 }
 0x27b   :  { %v765_v29 = vpop.eup %764  ;;  %596 = vst.msk [vmem:[%s1073_s7 + $0x38] sm:$0xff] %vm588_vm3, %v763_v28  ;;  %782 = vrcp.f32 %v564_v27 }
 0x27c   :  { %v767_v30 = vpop.eup %766  ;;  %v565_v31 = vadd.f32 1.0, %v765_v29 }
 0x27d   :  { %v568_v32 = vadd.f32 1.0, %v767_v30 }
 0x27e   :  { %v769_v33 = vpop.eup %768  ;;  %784 = vrcp.f32 %v565_v31 }
 0x27f   :  { %v771_v34 = vpop.eup %770  ;;  %786 = vrcp.f32 %v568_v32  ;;  %v569_v35 = vadd.f32 1.0, %v769_v33 }
 0x280   :  { %v773_v36 = vpop.eup %772  ;;  %593 = vst.msk [vmem:[%s1073_s7 + $0x20] sm:$0xff] %vm588_vm3, %v771_v34 }
 0x281   :  { %v775_v38 = vpop.eup %774  ;;  %594 = vst.msk [vmem:[%s1073_s7 + $0x28] sm:$0xff] %vm588_vm3, %v773_v36  ;;  %788 = vrcp.f32 %v569_v35 }
 0x282   :  { %v777_v39 = vpop.eup %776  ;;  %v570_v40 = vadd.f32 1.0, %v775_v38 }
 0x283   :  { %v779_v41 = vpop.eup %778  ;;  %v571_v42 = vadd.f32 1.0, %v777_v39 }
 0x284   :  { %v781_v43 = vpop.eup %780  ;;  %599 = vst.msk [vmem:[%s1073_s7 + $0x50] sm:$0xff] %vm588_vm3, %v779_v41  ;;  %790 = vrcp.f32 %v570_v40 }
 0x285   :  { %v783_v44 = vpop.eup %782  ;;  %600 = vst.msk [vmem:[%s1073_s7 + $0x58] sm:$0xff] %vm588_vm3, %v781_v43  ;;  %792 = vrcp.f32 %v571_v42 }
 0x286   :  { %597 = vst.msk [vmem:[%s1073_s7 + $0x40] sm:$0xff] %vm588_vm3, %v783_v44 }
 0x288   :  { %v785_v45 = vpop.eup %784 }
 0x289   :  { %v787_v46 = vpop.eup %786  ;;  %598 = vst.msk [vmem:[%s1073_s7 + $0x48] sm:$0xff] %vm588_vm3, %v785_v45 }
 0x28a   :  { %601 = vst.msk [vmem:[%s1073_s7 + $0x60] sm:$0xff] %vm588_vm3, %v787_v46 }
 0x28b   :  { %v789_v48 = vpop.eup %788 }
 0x28c   :  { %602 = vst.msk [vmem:[%s1073_s7 + $0x68] sm:$0xff] %vm588_vm3, %v789_v48 }
 0x28e   :  { %v791_v37 = vpop.eup %790 }
 0x28f   :  { %v793_v49 = vpop.eup %792  ;;  %603 = vst.msk [vmem:[%s1073_s7 + $0x70] sm:$0xff] %vm588_vm3, %v791_v37 }
 0x290   :  { %604 = vst.msk [vmem:[%s1073_s7 + $0x78] sm:$0xff] %vm588_vm3, %v793_v49 }

</bundles_post_ra>
